<compile_context>
chip_gen: v7x
topology: tpu7x:2x2x1
jax: 0.10.0
libtpu: 0.0.40
codegen_flags: <defaults>
</compile_context>

<pallas_src>
import functools
import math

import numpy as np

import jax
import jax.numpy as jnp
from jax.experimental import pallas as pl
from jax.experimental.pallas import tpu as pltpu


# ---------------------------------------------------------------------------
# Kernels
# ---------------------------------------------------------------------------
def _pa_kernel_bcast(x_ref, w_ref, pb_ref, o_ref, *, bpt, seq):
    """out = x @ W_x^T + pe_bias, pe_bias (S, D) broadcast over bpt sequences.

    x_ref : (TM, D)  row tile of the flattened (B*S, D) input (TM = bpt * seq)
    w_ref : (D, D)   pre-transposed weight slice W[:, :D].T  (K, N orientation)
    pb_ref: (S, D)   precomputed pe[:S] @ W[:, D:].T + b   (fp32, grid-invariant)
    o_ref : (TM, D)
    """
    acc = jnp.dot(x_ref[...], w_ref[...], preferred_element_type=jnp.float32)
    tm, d = o_ref.shape
    acc = acc.reshape(bpt, seq, d) + pb_ref[...][None, :, :]
    o_ref[...] = acc.reshape(tm, d).astype(o_ref.dtype)


def _pa_kernel_flat(x_ref, w_ref, pb_ref, o_ref):
    """Fallback: pe_bias already tiled to (TM, D) in the wrapper."""
    acc = jnp.dot(x_ref[...], w_ref[...], preferred_element_type=jnp.float32)
    o_ref[...] = (acc + pb_ref[...]).astype(o_ref.dtype)


# ---------------------------------------------------------------------------
# Sinusoidal buffer (same values as the PyTorch module's `pe`)
# ---------------------------------------------------------------------------
def make_sinusoidal_pe(max_len: int, d_model: int) -> jnp.ndarray:
    position = jnp.arange(max_len, dtype=jnp.float32)[:, None]          # (L, 1)
    div_term = jnp.exp(
        jnp.arange(0, d_model, 2, dtype=jnp.float32)
        * (-math.log(10000.0) / d_model)
    )                                                                    # (D/2,)
    ang = position * div_term                                            # (L, D/2)
    pe = jnp.zeros((max_len, d_model), dtype=jnp.float32)
    pe = pe.at[:, 0::2].set(jnp.sin(ang))
    pe = pe.at[:, 1::2].set(jnp.cos(ang))
    return pe                                                            # (L, D)


# ---------------------------------------------------------------------------
# Wrapper
# ---------------------------------------------------------------------------
def positional_appender_forward(x, pe_full, weight, bias, *,
                                compute_dtype=jnp.bfloat16,
                                target_rows: int = 1024):
    """
    x       : (B, S, D)
    pe_full : (max_len, D) sinusoidal buffer
    weight  : (D, 2D) Linear weight (PyTorch convention: out_features x in_features)
    bias    : (D,)
    returns : (B, S, D) in x.dtype
    """
    B, S, D = x.shape
    out_dtype = x.dtype

    # ---- fold the batch-invariant positional term into a per-position bias ----
    pe = pe_full[:S, :].astype(jnp.float32)
    wp_t = weight[:, D:].astype(jnp.float32).T                       # (D, D)
    pe_bias = jnp.dot(pe, wp_t, precision=jax.lax.Precision.HIGHEST) \
        + bias.astype(jnp.float32)                                   # (S, D) fp32

    # Pre-transposed x-half of the weight -> (K, N) orientation for the MXU.
    cdt = jnp.dtype(compute_dtype) if compute_dtype is not None else jnp.dtype(x.dtype)
    wx_t = weight[:, :D].T.astype(cdt)                               # (D, D)
    x2 = x.reshape(B * S, D).astype(cdt)

    # ---- generation-aware VMEM budget ----
    try:
        vmem_cap = int(getattr(pltpu.get_tpu_info(), "vmem_capacity_bytes",
                               64 * 1024 * 1024))
    except Exception:  # e.g. interpret mode / no TPU runtime info
        vmem_cap = 64 * 1024 * 1024
    budget = int(0.75 * vmem_cap)

    x_item = cdt.itemsize
    out_item = jnp.dtype(out_dtype).itemsize
    w_bytes = D * D * x_item
    use_bcast = (S % 8 == 0)            # sublane-aligned in-kernel broadcast add
    pb_fixed_bytes = (S * D * 4) if use_bcast else 0
    per_row = 2 * D * x_item + 2 * D * out_item      # double-buffered x + out
    if not use_bcast:
        per_row += 2 * D * 4                         # tiled pe_bias grows with TM
    rows_budget = max(16, (budget - 2 * w_bytes - 2 * pb_fixed_bytes)
                      // max(per_row, 1))

    # ---- row-tile (TM = bpt * S) selection, sublane aligned ----
    sub = 16 if x_item == 2 else 8                   # bf16 packs 16 sublanes
    bpt_min = sub // math.gcd(S, sub)                # smallest bpt with TM % sub == 0
    rows_cap = int(min(target_rows, rows_budget))
    bpt = max(bpt_min, (rows_cap // max(S, 1)) // bpt_min * bpt_min)
    b_ceil = -(-B // bpt_min) * bpt_min              # B rounded up to bpt_min multiple
    bpt = min(bpt, b_ceil)
    # Prefer >= 2 grid steps (megacore on v7x, DMA/compute overlap) when the
    # tiles stay reasonably large.
    if -(-B // bpt) < 2:
        half = (bpt // 2) // bpt_min * bpt_min
        if half >= bpt_min and half * S >= 256:
            bpt = half
    B_pad = -(-B // bpt) * bpt
    TM = bpt * S
    n_tiles = B_pad // bpt
    M_pad = B_pad * S

    if B_pad != B:
        x2 = jnp.concatenate(
            [x2, jnp.zeros(((B_pad - B) * S, D), dtype=x2.dtype)], axis=0)

    def _run(bcast_mode: bool, single_buffer_invariants: bool):
        if bcast_mode:
            pb = pe_bias                                            # (S, D)
            pb_block = (S, D)
            kernel_fn = functools.partial(_pa_kernel_bcast, bpt=bpt, seq=S)
        else:
            pb = jnp.tile(pe_bias, (bpt, 1))                        # (TM, D)
            pb_block = (TM, D)
            kernel_fn = _pa_kernel_flat

        inv_kwargs = ({"pipeline_mode": pl.Buffered(1)}
                      if single_buffer_invariants else {})

        vmem_need = (2 * TM * D * x_item          # x double buffer
                     + 2 * TM * D * out_item      # out double buffer
                     + 2 * w_bytes                # weight (worst case: double)
                     + 2 * pb_block[0] * D * 4)   # pe_bias (worst case: double)
        vmem_limit = int(min(max(int(vmem_need * 1.25), 32 * 1024 * 1024),
                             int(0.9 * vmem_cap)))

        grid_spec = pltpu.PrefetchScalarGridSpec(
            num_scalar_prefetch=0,
            grid=(n_tiles,),
            in_specs=[
                pl.BlockSpec((TM, D), lambda i: (i, 0)),                   # x rows
                pl.BlockSpec((D, D), lambda i: (0, 0), **inv_kwargs),      # W_x^T
                pl.BlockSpec(pb_block, lambda i: (0, 0), **inv_kwargs),    # pe bias
            ],
            out_specs=pl.BlockSpec((TM, D), lambda i: (i, 0)),
        )
        return pl.pallas_call(
            kernel_fn,
            out_shape=jax.ShapeDtypeStruct((M_pad, D), out_dtype),
            grid_spec=grid_spec,
            compiler_params=pltpu.CompilerParams(
                dimension_semantics=("parallel",),
                vmem_limit_bytes=vmem_limit,
            ),
        )(x2, wx_t, pb)

    # Robustness ladder: preferred config first, then graceful fallbacks
    # (e.g. if this JAX build rejects Buffered(1) or the broadcast reshape).
    attempts = []
    if use_bcast:
        attempts += [(True, True), (True, False)]
    attempts += [(False, True), (False, False)]

    out2, last_err = None, None
    for bcast_mode, single_buf in attempts:
        try:
            out2 = _run(bcast_mode, single_buf)
            break
        except Exception as e:      # noqa: BLE001 — fallback on lowering issues
            last_err = e
    if out2 is None:
        raise last_err

    return out2[: B * S].reshape(B, S, D)


# ---------------------------------------------------------------------------
# Demo / self-check
# ---------------------------------------------------------------------------
if __name__ == "__main__":
    # Shapes consistent with the module's forward: x [batch, seq_len, d_model].
    B, S, D = 2, 8, 32
    MAX_LEN = 64

    key = jax.random.PRNGKey(0)
    kx, kw, kb = jax.random.split(key, 3)

    x = jax.random.normal(kx, (B, S, D), dtype=jnp.float32)

    # nn.Linear(2*D, D) init: U(-1/sqrt(in_features), 1/sqrt(in_features))
    bound = 1.0 / math.sqrt(2 * D)
    weight = jax.random.uniform(kw, (D, 2 * D), minval=-bound, maxval=bound,
                                dtype=jnp.float32)
    bias = jax.random.uniform(kb, (D,), minval=-bound, maxval=bound,
                              dtype=jnp.float32)

    pe_full = make_sinusoidal_pe(MAX_LEN, D)

    # float64 host reference (eval-mode dropout = identity): concat + dense.
    x_np = np.asarray(x, dtype=np.float64)
    pe_np = np.asarray(pe_full[:S], dtype=np.float64)
    app = np.concatenate([x_np, np.broadcast_to(pe_np[None], x_np.shape)], axis=-1)
    ref = app @ np.asarray(weight, dtype=np.float64).T + np.asarray(bias, np.float64)

    # fp32 compute path (tolerance accounts for the MXU's default fp32->bf16
    # matmul passes).
    out_f32 = positional_appender_forward(x, pe_full, weight, bias,
                                          compute_dtype=jnp.float32)
    out_f32 = jax.block_until_ready(out_f32)
    assert out_f32.shape == (B, S, D)
    assert np.allclose(np.asarray(out_f32), ref, atol=2e-2, rtol=2e-2), \
        "fp32 path mismatch vs reference"

    # Default bf16 MXU path (fp32 accumulation; looser tolerance).
    out_bf16 = jax.block_until_ready(
        positional_appender_forward(x, pe_full, weight, bias))
    assert out_bf16.shape == (B, S, D)
    assert np.allclose(np.asarray(out_bf16), ref, atol=5e-2, rtol=5e-2), \
        "bf16 path mismatch vs reference"

    print("KERNEL_OK")
</pallas_src>

<mosaic_0001>
module attributes {stable_mosaic.version = 11 : i64} {
  func.func @_pa_kernel_bcast(%arg0: i32, %arg1: memref<16x32xf32, #tpu.memory_space<vmem>>, %arg2: memref<32x32xf32, #tpu.memory_space<vmem>>, %arg3: memref<8x32xf32, #tpu.memory_space<vmem>>, %arg4: memref<16x32xf32, #tpu.memory_space<vmem>>) attributes {dimension_semantics = [#tpu.dimension_semantics<parallel>], iteration_bounds = array<i64: 1>, scalar_prefetch = 0 : i64, scratch_operands = 0 : i64, tpu.core_type = #tpu.core_type<tc>, window_params = [{transform_indices = @transform_0, window_bounds = array<i64: 16, 32>}, {pipeline_mode = #tpu.pipeline_mode<synchronous>, transform_indices = @transform_1, window_bounds = array<i64: 32, 32>}, {pipeline_mode = #tpu.pipeline_mode<synchronous>, transform_indices = @transform_2, window_bounds = array<i64: 8, 32>}, {transform_indices = @transform_3, window_bounds = array<i64: 16, 32>}]} {
    %c0 = arith.constant 0 : index
    %c0_0 = arith.constant 0 : index
    %0 = vector.load %arg1[%c0, %c0_0] : memref<16x32xf32, #tpu.memory_space<vmem>>, vector<16x32xf32>
    %c0_1 = arith.constant 0 : index
    %c0_2 = arith.constant 0 : index
    %1 = vector.load %arg2[%c0_1, %c0_2] : memref<32x32xf32, #tpu.memory_space<vmem>>, vector<32x32xf32>
    %cst = arith.constant dense<0.000000e+00> : vector<16x32xf32>
    %2 = tpu.matmul %0, %1, %cst {dimension_numbers = #tpu.dot_dimension_numbers<[1], [0], [0], [1], [0, 0, 1, 1], [], []>} : vector<16x32xf32>, vector<32x32xf32>, vector<16x32xf32> -> vector<16x32xf32>
    %3 = vector.shape_cast %2 : vector<16x32xf32> to vector<2x8x32xf32>
    %c0_3 = arith.constant 0 : index
    %c0_4 = arith.constant 0 : index
    %4 = vector.load %arg3[%c0_3, %c0_4] : memref<8x32xf32, #tpu.memory_space<vmem>>, vector<8x32xf32>
    %5 = vector.shape_cast %4 : vector<8x32xf32> to vector<1x8x32xf32>
    %6 = vector.broadcast %5 : vector<1x8x32xf32> to vector<2x8x32xf32>
    %7 = arith.addf %3, %6 : vector<2x8x32xf32>
    %8 = vector.shape_cast %7 : vector<2x8x32xf32> to vector<16x32xf32>
    %c0_5 = arith.constant 0 : index
    %c0_6 = arith.constant 0 : index
    %9 = vector.load %arg4[%c0_5, %c0_6] : memref<16x32xf32, #tpu.memory_space<vmem>>, vector<16x32xf32>
    tpu.vector_store %arg4[%c0_5, %c0_6], %8 {strides = array<i32>} : memref<16x32xf32, #tpu.memory_space<vmem>>, vector<16x32xf32>,
    return
  }
  func.func @transform_0(%arg0: i32) -> (i32, i32) {
    %c0_i32 = arith.constant 0 : i32
    %c0_i32_0 = arith.constant 0 : i32
    return %arg0, %c0_i32 : i32, i32
  }
  func.func @transform_1(%arg0: i32) -> (i32, i32) {
    %c0_i32 = arith.constant 0 : i32
    %c0_i32_0 = arith.constant 0 : i32
    %c0_i32_1 = arith.constant 0 : i32
    return %c0_i32, %c0_i32_0 : i32, i32
  }
  func.func @transform_2(%arg0: i32) -> (i32, i32) {
    %c0_i32 = arith.constant 0 : i32
    %c0_i32_0 = arith.constant 0 : i32
    %c0_i32_1 = arith.constant 0 : i32
    return %c0_i32, %c0_i32_0 : i32, i32
  }
  func.func @transform_3(%arg0: i32) -> (i32, i32) {
    %c0_i32 = arith.constant 0 : i32
    %c0_i32_0 = arith.constant 0 : i32
    return %arg0, %c0_i32 : i32, i32
  }
}

module attributes {stable_mosaic.version = 11 : i64} {
  func.func @_pa_kernel_bcast(%arg0: i32, %arg1: memref<16x32xf32, #tpu.memory_space<vmem>>, %arg2: memref<32x32xf32, #tpu.memory_space<vmem>>, %arg3: memref<8x32xf32, #tpu.memory_space<vmem>>, %arg4: memref<16x32xf32, #tpu.memory_space<vmem>>) attributes {dimension_semantics = [#tpu.dimension_semantics<parallel>], iteration_bounds = array<i64: 1>, scalar_prefetch = 0 : i64, scratch_operands = 0 : i64, tpu.core_type = #tpu.core_type<tc>, window_params = [{transform_indices = @transform_0, window_bounds = array<i64: 16, 32>}, {pipeline_mode = #tpu.pipeline_mode<synchronous>, transform_indices = @transform_1, window_bounds = array<i64: 32, 32>}, {pipeline_mode = #tpu.pipeline_mode<synchronous>, transform_indices = @transform_2, window_bounds = array<i64: 8, 32>}, {transform_indices = @transform_3, window_bounds = array<i64: 16, 32>}]} {
    %c0 = arith.constant 0 : index
    %c0_0 = arith.constant 0 : index
    %0 = vector.load %arg1[%c0, %c0_0] : memref<16x32xf32, #tpu.memory_space<vmem>>, vector<16x32xf32>
    %c0_1 = arith.constant 0 : index
    %c0_2 = arith.constant 0 : index
    %1 = vector.load %arg2[%c0_1, %c0_2] : memref<32x32xf32, #tpu.memory_space<vmem>>, vector<32x32xf32>
    %cst = arith.constant dense<0.000000e+00> : vector<16x32xf32>
    %2 = tpu.matmul %0, %1, %cst {dimension_numbers = #tpu.dot_dimension_numbers<[1], [0], [0], [1], [0, 0, 1, 1], [], []>} : vector<16x32xf32>, vector<32x32xf32>, vector<16x32xf32> -> vector<16x32xf32>
    %3 = vector.shape_cast %2 : vector<16x32xf32> to vector<2x8x32xf32>
    %c0_3 = arith.constant 0 : index
    %c0_4 = arith.constant 0 : index
    %4 = vector.load %arg3[%c0_3, %c0_4] : memref<8x32xf32, #tpu.memory_space<vmem>>, vector<8x32xf32>
    %5 = vector.shape_cast %4 : vector<8x32xf32> to vector<1x8x32xf32>
    %6 = vector.broadcast %5 : vector<1x8x32xf32> to vector<2x8x32xf32>
    %7 = arith.addf %3, %6 : vector<2x8x32xf32>
    %8 = vector.shape_cast %7 : vector<2x8x32xf32> to vector<16x32xf32>
    %c0_5 = arith.constant 0 : index
    %c0_6 = arith.constant 0 : index
    %9 = vector.load %arg4[%c0_5, %c0_6] : memref<16x32xf32, #tpu.memory_space<vmem>>, vector<16x32xf32>
    tpu.vector_store %arg4[%c0_5, %c0_6], %8 {strides = array<i32>} : memref<16x32xf32, #tpu.memory_space<vmem>>, vector<16x32xf32>,
    return
  }
  func.func @transform_0(%arg0: i32) -> (i32, i32) {
    %c0_i32 = arith.constant 0 : i32
    %c0_i32_0 = arith.constant 0 : i32
    return %arg0, %c0_i32 : i32, i32
  }
  func.func @transform_1(%arg0: i32) -> (i32, i32) {
    %c0_i32 = arith.constant 0 : i32
    %c0_i32_0 = arith.constant 0 : i32
    %c0_i32_1 = arith.constant 0 : i32
    return %c0_i32, %c0_i32_0 : i32, i32
  }
  func.func @transform_2(%arg0: i32) -> (i32, i32) {
    %c0_i32 = arith.constant 0 : i32
    %c0_i32_0 = arith.constant 0 : i32
    %c0_i32_1 = arith.constant 0 : i32
    return %c0_i32, %c0_i32_0 : i32, i32
  }
  func.func @transform_3(%arg0: i32) -> (i32, i32) {
    %c0_i32 = arith.constant 0 : i32
    %c0_i32_0 = arith.constant 0 : i32
    return %arg0, %c0_i32 : i32, i32
  }
}

module attributes {stable_mosaic.version = 11 : i64} {
  func.func @_pa_kernel_flat(%arg0: i32, %arg1: memref<16x32xf32, #tpu.memory_space<vmem>>, %arg2: memref<32x32xf32, #tpu.memory_space<vmem>>, %arg3: memref<16x32xf32, #tpu.memory_space<vmem>>, %arg4: memref<16x32xf32, #tpu.memory_space<vmem>>) attributes {dimension_semantics = [#tpu.dimension_semantics<parallel>], iteration_bounds = array<i64: 1>, scalar_prefetch = 0 : i64, scratch_operands = 0 : i64, tpu.core_type = #tpu.core_type<tc>, window_params = [{transform_indices = @transform_0, window_bounds = array<i64: 16, 32>}, {pipeline_mode = #tpu.pipeline_mode<synchronous>, transform_indices = @transform_1, window_bounds = array<i64: 32, 32>}, {pipeline_mode = #tpu.pipeline_mode<synchronous>, transform_indices = @transform_2, window_bounds = array<i64: 16, 32>}, {transform_indices = @transform_3, window_bounds = array<i64: 16, 32>}]} {
    %c0 = arith.constant 0 : index
    %c0_0 = arith.constant 0 : index
    %0 = vector.load %arg1[%c0, %c0_0] : memref<16x32xf32, #tpu.memory_space<vmem>>, vector<16x32xf32>
    %c0_1 = arith.constant 0 : index
    %c0_2 = arith.constant 0 : index
    %1 = vector.load %arg2[%c0_1, %c0_2] : memref<32x32xf32, #tpu.memory_space<vmem>>, vector<32x32xf32>
    %cst = arith.constant dense<0.000000e+00> : vector<16x32xf32>
    %2 = tpu.matmul %0, %1, %cst {dimension_numbers = #tpu.dot_dimension_numbers<[1], [0], [0], [1], [0, 0, 1, 1], [], []>} : vector<16x32xf32>, vector<32x32xf32>, vector<16x32xf32> -> vector<16x32xf32>
    %c0_3 = arith.constant 0 : index
    %c0_4 = arith.constant 0 : index
    %3 = vector.load %arg3[%c0_3, %c0_4] : memref<16x32xf32, #tpu.memory_space<vmem>>, vector<16x32xf32>
    %4 = arith.addf %2, %3 : vector<16x32xf32>
    %c0_5 = arith.constant 0 : index
    %c0_6 = arith.constant 0 : index
    %5 = vector.load %arg4[%c0_5, %c0_6] : memref<16x32xf32, #tpu.memory_space<vmem>>, vector<16x32xf32>
    tpu.vector_store %arg4[%c0_5, %c0_6], %4 {strides = array<i32>} : memref<16x32xf32, #tpu.memory_space<vmem>>, vector<16x32xf32>,
    return
  }
  func.func @transform_0(%arg0: i32) -> (i32, i32) {
    %c0_i32 = arith.constant 0 : i32
    %c0_i32_0 = arith.constant 0 : i32
    return %arg0, %c0_i32 : i32, i32
  }
  func.func @transform_1(%arg0: i32) -> (i32, i32) {
    %c0_i32 = arith.constant 0 : i32
    %c0_i32_0 = arith.constant 0 : i32
    %c0_i32_1 = arith.constant 0 : i32
    return %c0_i32, %c0_i32_0 : i32, i32
  }
  func.func @transform_2(%arg0: i32) -> (i32, i32) {
    %c0_i32 = arith.constant 0 : i32
    %c0_i32_0 = arith.constant 0 : i32
    %c0_i32_1 = arith.constant 0 : i32
    return %c0_i32, %c0_i32_0 : i32, i32
  }
  func.func @transform_3(%arg0: i32) -> (i32, i32) {
    %c0_i32 = arith.constant 0 : i32
    %c0_i32_0 = arith.constant 0 : i32
    return %arg0, %c0_i32 : i32, i32
  }
}

module attributes {stable_mosaic.version = 11 : i64} {
  func.func @_pa_kernel_flat(%arg0: i32, %arg1: memref<16x32xf32, #tpu.memory_space<vmem>>, %arg2: memref<32x32xf32, #tpu.memory_space<vmem>>, %arg3: memref<16x32xf32, #tpu.memory_space<vmem>>, %arg4: memref<16x32xf32, #tpu.memory_space<vmem>>) attributes {dimension_semantics = [#tpu.dimension_semantics<parallel>], iteration_bounds = array<i64: 1>, scalar_prefetch = 0 : i64, scratch_operands = 0 : i64, tpu.core_type = #tpu.core_type<tc>, window_params = [{transform_indices = @transform_0, window_bounds = array<i64: 16, 32>}, {pipeline_mode = #tpu.pipeline_mode<synchronous>, transform_indices = @transform_1, window_bounds = array<i64: 32, 32>}, {pipeline_mode = #tpu.pipeline_mode<synchronous>, transform_indices = @transform_2, window_bounds = array<i64: 16, 32>}, {transform_indices = @transform_3, window_bounds = array<i64: 16, 32>}]} {
    %c0 = arith.constant 0 : index
    %c0_0 = arith.constant 0 : index
    %0 = vector.load %arg1[%c0, %c0_0] : memref<16x32xf32, #tpu.memory_space<vmem>>, vector<16x32xf32>
    %c0_1 = arith.constant 0 : index
    %c0_2 = arith.constant 0 : index
    %1 = vector.load %arg2[%c0_1, %c0_2] : memref<32x32xf32, #tpu.memory_space<vmem>>, vector<32x32xf32>
    %cst = arith.constant dense<0.000000e+00> : vector<16x32xf32>
    %2 = tpu.matmul %0, %1, %cst {dimension_numbers = #tpu.dot_dimension_numbers<[1], [0], [0], [1], [0, 0, 1, 1], [], []>} : vector<16x32xf32>, vector<32x32xf32>, vector<16x32xf32> -> vector<16x32xf32>
    %c0_3 = arith.constant 0 : index
    %c0_4 = arith.constant 0 : index
    %3 = vector.load %arg3[%c0_3, %c0_4] : memref<16x32xf32, #tpu.memory_space<vmem>>, vector<16x32xf32>
    %4 = arith.addf %2, %3 : vector<16x32xf32>
    %c0_5 = arith.constant 0 : index
    %c0_6 = arith.constant 0 : index
    %5 = vector.load %arg4[%c0_5, %c0_6] : memref<16x32xf32, #tpu.memory_space<vmem>>, vector<16x32xf32>
    tpu.vector_store %arg4[%c0_5, %c0_6], %4 {strides = array<i32>} : memref<16x32xf32, #tpu.memory_space<vmem>>, vector<16x32xf32>,
    return
  }
  func.func @transform_0(%arg0: i32) -> (i32, i32) {
    %c0_i32 = arith.constant 0 : i32
    %c0_i32_0 = arith.constant 0 : i32
    return %arg0, %c0_i32 : i32, i32
  }
  func.func @transform_1(%arg0: i32) -> (i32, i32) {
    %c0_i32 = arith.constant 0 : i32
    %c0_i32_0 = arith.constant 0 : i32
    %c0_i32_1 = arith.constant 0 : i32
    return %c0_i32, %c0_i32_0 : i32, i32
  }
  func.func @transform_2(%arg0: i32) -> (i32, i32) {
    %c0_i32 = arith.constant 0 : i32
    %c0_i32_0 = arith.constant 0 : i32
    %c0_i32_1 = arith.constant 0 : i32
    return %c0_i32, %c0_i32_0 : i32, i32
  }
  func.func @transform_3(%arg0: i32) -> (i32, i32) {
    %c0_i32 = arith.constant 0 : i32
    %c0_i32_0 = arith.constant 0 : i32
    return %arg0, %c0_i32 : i32, i32
  }
}

</mosaic_0001>

<bundles_post_ra>
// kernel: tpu_custom_call.1
= control target key start
LH: loop header
LB: loop body
LE: loop exit
PB: predicated region body
PF: predicated region fallthrough
CT: control target
= control target key end

     0   :  { %8 = vsyncpa [#allocation3], 0  ;;  %s386_s0 = inlined_call_operand.hbm [shape: f32[16,32], index: 0, kind: input, shape index: {}]   ;;  %s387_s1 = inlined_call_operand.hbm [shape: f32[32,32], index: 1, kind: input, shape index: {}]   ;;  %s388_s2 = inlined_call_operand.hbm [shape: f32[8,32], index: 2, kind: input, shape index: {}]   ;;  %s389_s3 = inlined_call_operand.hbm [shape: f32[16,32], index: 3, kind: output, shape index: {}]  }
   0x1   :  { %9 = vsyncpa [#allocation6], 0 }
   0x2   :  { %10 = vsyncpa [#allocation4], 0  ;;  %s292_s12 = smov [#allocation5]   ;;  %s293_s14 = smov [#allocation2]  }
   0x3   :  { %s28_s13 = sshll.u32 %s292_s12, 4  ;;  %s16_s15 = sshll.u32 %s293_s14, 4  ;;  %s29_s13 = int_to_ptr.vmem [resolvable:$true] %s28_s13  ;;  %s318_s15 = int_to_ptr.vmem [resolvable:$true] %s16_s15 }
   0x4   :  { %s198_s18 = scalar_lea.hbm %s387_s1, 512 }
   0x5   :  { %p199_p0 = scmp.ne.s32.totalorder %s387_s1, %s198_s18  ;;  %p202_p1 = scmp.lt.u32.totalorder %s198_s18, %s387_s1 }
   0x7   :  { %p204_p2 = pnand %p202_p1, %p199_p0 }
   0x9   :  { %207 = shalt.err (!%p204_p2)
}
   0xa   :  { %s208_s23 = scalar_lea.vmem %s29_s13, 512  ;;  %p213_p4 = scmp.lt.s32.totalorder %s29_s13, %s29_s13 }
   0xb   :  { %p209_p3 = scmp.ne.s32.totalorder %s29_s13, %s208_s23  ;;  %p214_p5 = scmp.lt.s32.totalorder %s208_s23, %s208_s23 }
   0xd   :  { %p215_p6 = por %p214_p5, %p213_p4 }
   0xf   :  { %p216_p7 = pnand %p215_p6, %p209_p3 }
  0x11   :  { %219 = shalt.err (!%p216_p7)
}
  0x12   :  { %s294_s24 = smov 128   ;;  %s295_s25 = smov 8  }
  0x13   :  { %34 = dma.hbm_to_vmem [thread:$0]  %s387_s1, 512, %s29_s13, [#allocation6], %s294_s24, %s294_s24, %s295_s25  }
  0x14   :  { %s220_s30 = scalar_lea.hbm %s386_s0, 256 }
  0x15   :  { %p221_p8 = scmp.ne.s32.totalorder %s386_s0, %s220_s30  ;;  %p224_p9 = scmp.lt.u32.totalorder %s220_s30, %s386_s0 }
  0x17   :  { %p226_p10 = pnand %p224_p9, %p221_p8 }
  0x19   :  { %229 = shalt.err (!%p226_p10)
}
  0x1a   :  { %s230_s8 = scalar_lea.vmem %s318_s15, 256  ;;  %p235_p12 = scmp.lt.s32.totalorder %s318_s15, %s318_s15 }
  0x1b   :  { %p231_p11 = scmp.ne.s32.totalorder %s318_s15, %s230_s8  ;;  %p236_p13 = scmp.lt.s32.totalorder %s230_s8, %s230_s8 }
  0x1d   :  { %p237_p0 = por %p236_p13, %p235_p12 }
  0x1f   :  { %p238_p1 = pnand %p237_p0, %p231_p11 }
  0x21   :  { %241 = shalt.err (!%p238_p1)
}
  0x22   :  { %22 = dma.hbm_to_vmem [thread:$0]  %s386_s0, 256, %s318_s15, [#allocation3], %s294_s24, %s294_s24, %s295_s25  }
  0x23   :  { %s296_s10 = smov [#allocation7]   ;;  %s242_s14 = scalar_lea.hbm %s388_s2, 128 }
  0x24   :  { %s41_s11 = sshll.u32 %s296_s10, 4  ;;  %p243_p2 = scmp.ne.s32.totalorder %s388_s2, %s242_s14  ;;  %s42_s11 = int_to_ptr.vmem [resolvable:$true] %s41_s11 }
  0x25   :  { %p246_p3 = scmp.lt.u32.totalorder %s242_s14, %s388_s2 }
  0x27   :  { %p248_p4 = pnand %p246_p3, %p243_p2 }
  0x29   :  { %251 = shalt.err (!%p248_p4)
}
  0x2a   :  { %s252_s20 = scalar_lea.vmem %s42_s11, 128  ;;  %p257_p6 = scmp.lt.s32.totalorder %s42_s11, %s42_s11 }
  0x2b   :  { %p253_p5 = scmp.ne.s32.totalorder %s42_s11, %s252_s20  ;;  %p258_p7 = scmp.lt.s32.totalorder %s252_s20, %s252_s20 }
  0x2d   :  { %p259_p8 = por %p258_p7, %p257_p6 }
  0x2f   :  { %p260_p9 = pnand %p259_p8, %p253_p5 }
  0x31   :  { %263 = shalt.err (!%p260_p9)
}
  0x32   :  { %44 = dma.hbm_to_vmem [thread:$0]  %s388_s2, 128, %s42_s11, [#allocation6]  }
  0x33   :  { %286 = dma.done.wait [#allocation3], 256  }
  0x34   :  { %287 = vsyncadd [#allocation3], 4294967040 }
  0x35   :  { %288 = dma.done.wait [#allocation6], 640  }
  0x36   :  { %289 = vsyncadd [#allocation6], 4294966656  ;;  %vm60_vm0 = vcmask 261120   ;;  %v56_v0 = vld [vmem:[#allocation5] sm:$0xff]  ;;  %v57_v1 = vld [vmem:[#allocation5 + $0x8] sm:$0xff]  ;;  %s297_s2 = smov [#allocation8]  }
  0x37   :  { %v58_v2 = vld [vmem:[#allocation5 + $0x10] sm:$0xff]  ;;  %v184_v3 = vpack.c.bf16 %v57_v1, %v56_v0  ;;  %v59_v4 = vld [vmem:[#allocation5 + $0x18] sm:$0xff]  ;;  %v142_v8 = vld [vmem:[#allocation7] sm:$0xff]  ;;  %s152_s21 = sshll.u32 %s297_s2, 4  ;;  %s153_s21 = int_to_ptr.vmem [resolvable:$true] %s152_s21 }
  0x38   :  { %v54_v5 = vld [vmem:[#allocation2] sm:$0xff]  ;;  %v188_v6 = vpack.c.bf16 %v59_v4, %v58_v2  ;;  %v55_v7 = vld [vmem:[#allocation2 + $0x8] sm:$0xff]  ;;  %s264_s22 = scalar_lea.vmem %s153_s21, 256  ;;  %p269_p11 = scmp.lt.s32.totalorder %s153_s21, %s153_s21 }
  0x39   :  { %181 = vmatprep.mubr.msk.f32.mxu0 %vm60_vm0, %v54_v5  ;;  %185 = vmatprep.subr.bf16.mxu0 %v184_v3  ;;  %p265_p10 = scmp.ne.s32.totalorder %s153_s21, %s264_s22  ;;  %p270_p12 = scmp.lt.s32.totalorder %s264_s22, %s264_s22 }
  0x3a   :  { %187 = vmatpush3.bf16.msra.mxu0 %v184_v3 }
  0x3b   :  { %189 = vmatprep.subr.bf16.mxu0 %v188_v6  ;;  %p271_p13 = por %p270_p12, %p269_p11 }
  0x3d   :  { %p272_p0 = pnand %p271_p13, %p265_p10 }
  0x3e   :  { %191 = vmatpush3.bf16.msra.mxu0 %v188_v6 }
  0x41   :  { %182 = vmatmul.mubr.msk.f32.vlgmr.msra.gmra.mrb[0].mxu0 %vm60_vm0, %v55_v7 }
 0x114   :  { %v183_v9 = vpop.f32.mrb[0].mxu0 }
 0x115   :  { %v144_v10 = vadd.f32 %v183_v9, %v142_v8  ;;  %v133_v11 = vpop.f32.mrb[1].mxu0 }
 0x116   :  { %v143_v12 = vadd.f32 %v142_v8, %v133_v11 }
 0x117   :  { %146 = vst.msk [vmem:[#allocation8 + $0x8] sm:$0xff] %vm60_vm0, %v144_v10 }
 0x118   :  { %145 = vst.msk [vmem:[#allocation8] sm:$0xff] %vm60_vm0, %v143_v12 }
 0x119   :  { %275 = shalt.err (!%p272_p0)
}
 0x11a   :  { %s276_s27 = scalar_lea.hbm %s389_s3, 256 }
 0x11b   :  { %p277_p1 = scmp.ne.s32.totalorder %s389_s3, %s276_s27  ;;  %p280_p2 = scmp.lt.u32.totalorder %s276_s27, %s389_s3 }
 0x11d   :  { %p282_p3 = pnand %p280_p2, %p277_p1 }
 0x11f   :  { %285 = shalt.err (!%p282_p3)
}
 0x120   :  { %158 = dma.vmem_to_hbm [thread:$0]  %s153_s21, 256, %s389_s3, [#allocation4], %s294_s24, %s294_s24, %s295_s25  }
 0x121   :  { %290 = dma.done.wait [#allocation4], 256  }
 0x122   :  { %291 = vsyncadd [#allocation4], 4294967040 }
 0x123   :  { %162 = vsyncpa [#allocation3], 1 }
 0x124   :  { %163 = vsyncpa [#allocation6], 1 }
 0x125   :  { %164 = vsyncpa [#allocation4], 1 }

// kernel: tpu_custom_call.1
= control target key start
LH: loop header
LB: loop body
LE: loop exit
PB: predicated region body
PF: predicated region fallthrough
CT: control target
= control target key end

     0   :  { %8 = vsyncpa [#allocation3], 0  ;;  %s386_s0 = inlined_call_operand.hbm [shape: f32[16,32], index: 0, kind: input, shape index: {}]   ;;  %s387_s1 = inlined_call_operand.hbm [shape: f32[32,32], index: 1, kind: input, shape index: {}]   ;;  %s388_s2 = inlined_call_operand.hbm [shape: f32[8,32], index: 2, kind: input, shape index: {}]   ;;  %s389_s3 = inlined_call_operand.hbm [shape: f32[16,32], index: 3, kind: output, shape index: {}]  }
   0x1   :  { %9 = vsyncpa [#allocation6], 0 }
   0x2   :  { %10 = vsyncpa [#allocation4], 0  ;;  %s292_s12 = smov [#allocation5]   ;;  %s293_s14 = smov [#allocation2]  }
   0x3   :  { %s28_s13 = sshll.u32 %s292_s12, 4  ;;  %s16_s15 = sshll.u32 %s293_s14, 4  ;;  %s29_s13 = int_to_ptr.vmem [resolvable:$true] %s28_s13  ;;  %s318_s15 = int_to_ptr.vmem [resolvable:$true] %s16_s15 }
   0x4   :  { %s198_s18 = scalar_lea.hbm %s387_s1, 512 }
   0x5   :  { %p199_p0 = scmp.ne.s32.totalorder %s387_s1, %s198_s18  ;;  %p202_p1 = scmp.lt.u32.totalorder %s198_s18, %s387_s1 }
   0x7   :  { %p204_p2 = pnand %p202_p1, %p199_p0 }
   0x9   :  { %207 = shalt.err (!%p204_p2)
}
   0xa   :  { %s208_s23 = scalar_lea.vmem %s29_s13, 512  ;;  %p213_p4 = scmp.lt.s32.totalorder %s29_s13, %s29_s13 }
   0xb   :  { %p209_p3 = scmp.ne.s32.totalorder %s29_s13, %s208_s23  ;;  %p214_p5 = scmp.lt.s32.totalorder %s208_s23, %s208_s23 }
   0xd   :  { %p215_p6 = por %p214_p5, %p213_p4 }
   0xf   :  { %p216_p7 = pnand %p215_p6, %p209_p3 }
  0x11   :  { %219 = shalt.err (!%p216_p7)
}
  0x12   :  { %s294_s24 = smov 128   ;;  %s295_s25 = smov 8  }
  0x13   :  { %34 = dma.hbm_to_vmem [thread:$0]  %s387_s1, 512, %s29_s13, [#allocation6], %s294_s24, %s294_s24, %s295_s25  }
  0x14   :  { %s220_s30 = scalar_lea.hbm %s386_s0, 256 }
  0x15   :  { %p221_p8 = scmp.ne.s32.totalorder %s386_s0, %s220_s30  ;;  %p224_p9 = scmp.lt.u32.totalorder %s220_s30, %s386_s0 }
  0x17   :  { %p226_p10 = pnand %p224_p9, %p221_p8 }
  0x19   :  { %229 = shalt.err (!%p226_p10)
}
  0x1a   :  { %s230_s8 = scalar_lea.vmem %s318_s15, 256  ;;  %p235_p12 = scmp.lt.s32.totalorder %s318_s15, %s318_s15 }
  0x1b   :  { %p231_p11 = scmp.ne.s32.totalorder %s318_s15, %s230_s8  ;;  %p236_p13 = scmp.lt.s32.totalorder %s230_s8, %s230_s8 }
  0x1d   :  { %p237_p0 = por %p236_p13, %p235_p12 }
  0x1f   :  { %p238_p1 = pnand %p237_p0, %p231_p11 }
  0x21   :  { %241 = shalt.err (!%p238_p1)
}
  0x22   :  { %22 = dma.hbm_to_vmem [thread:$0]  %s386_s0, 256, %s318_s15, [#allocation3], %s294_s24, %s294_s24, %s295_s25  }
  0x23   :  { %s296_s10 = smov [#allocation7]   ;;  %s242_s14 = scalar_lea.hbm %s388_s2, 128 }
  0x24   :  { %s41_s11 = sshll.u32 %s296_s10, 4  ;;  %p243_p2 = scmp.ne.s32.totalorder %s388_s2, %s242_s14  ;;  %s42_s11 = int_to_ptr.vmem [resolvable:$true] %s41_s11 }
  0x25   :  { %p246_p3 = scmp.lt.u32.totalorder %s242_s14, %s388_s2 }
  0x27   :  { %p248_p4 = pnand %p246_p3, %p243_p2 }
  0x29   :  { %251 = shalt.err (!%p248_p4)
}
  0x2a   :  { %s252_s20 = scalar_lea.vmem %s42_s11, 128  ;;  %p257_p6 = scmp.lt.s32.totalorder %s42_s11, %s42_s11 }
  0x2b   :  { %p253_p5 = scmp.ne.s32.totalorder %s42_s11, %s252_s20  ;;  %p258_p7 = scmp.lt.s32.totalorder %s252_s20, %s252_s20 }
  0x2d   :  { %p259_p8 = por %p258_p7, %p257_p6 }
  0x2f   :  { %p260_p9 = pnand %p259_p8, %p253_p5 }
  0x31   :  { %263 = shalt.err (!%p260_p9)
}
  0x32   :  { %44 = dma.hbm_to_vmem [thread:$0]  %s388_s2, 128, %s42_s11, [#allocation6]  }
  0x33   :  { %286 = dma.done.wait [#allocation3], 256  }
  0x34   :  { %287 = vsyncadd [#allocation3], 4294967040 }
  0x35   :  { %288 = dma.done.wait [#allocation6], 640  }
  0x36   :  { %289 = vsyncadd [#allocation6], 4294966656  ;;  %vm60_vm0 = vcmask 261120   ;;  %v56_v0 = vld [vmem:[#allocation5] sm:$0xff]  ;;  %v57_v1 = vld [vmem:[#allocation5 + $0x8] sm:$0xff]  ;;  %s297_s2 = smov [#allocation8]  }
  0x37   :  { %v58_v2 = vld [vmem:[#allocation5 + $0x10] sm:$0xff]  ;;  %v184_v3 = vpack.c.bf16 %v57_v1, %v56_v0  ;;  %v59_v4 = vld [vmem:[#allocation5 + $0x18] sm:$0xff]  ;;  %v142_v8 = vld [vmem:[#allocation7] sm:$0xff]  ;;  %s152_s21 = sshll.u32 %s297_s2, 4  ;;  %s153_s21 = int_to_ptr.vmem [resolvable:$true] %s152_s21 }
  0x38   :  { %v54_v5 = vld [vmem:[#allocation2] sm:$0xff]  ;;  %v188_v6 = vpack.c.bf16 %v59_v4, %v58_v2  ;;  %v55_v7 = vld [vmem:[#allocation2 + $0x8] sm:$0xff]  ;;  %s264_s22 = scalar_lea.vmem %s153_s21, 256  ;;  %p269_p11 = scmp.lt.s32.totalorder %s153_s21, %s153_s21 }
  0x39   :  { %181 = vmatprep.mubr.msk.f32.mxu0 %vm60_vm0, %v54_v5  ;;  %185 = vmatprep.subr.bf16.mxu0 %v184_v3  ;;  %p265_p10 = scmp.ne.s32.totalorder %s153_s21, %s264_s22  ;;  %p270_p12 = scmp.lt.s32.totalorder %s264_s22, %s264_s22 }
  0x3a   :  { %187 = vmatpush3.bf16.msra.mxu0 %v184_v3 }
  0x3b   :  { %189 = vmatprep.subr.bf16.mxu0 %v188_v6  ;;  %p271_p13 = por %p270_p12, %p269_p11 }
  0x3d   :  { %p272_p0 = pnand %p271_p13, %p265_p10 }
  0x3e   :  { %191 = vmatpush3.bf16.msra.mxu0 %v188_v6 }
  0x41   :  { %182 = vmatmul.mubr.msk.f32.vlgmr.msra.gmra.mrb[0].mxu0 %vm60_vm0, %v55_v7 }
 0x114   :  { %v183_v9 = vpop.f32.mrb[0].mxu0 }
 0x115   :  { %v144_v10 = vadd.f32 %v183_v9, %v142_v8  ;;  %v133_v11 = vpop.f32.mrb[1].mxu0 }
 0x116   :  { %v143_v12 = vadd.f32 %v142_v8, %v133_v11 }
 0x117   :  { %146 = vst.msk [vmem:[#allocation8 + $0x8] sm:$0xff] %vm60_vm0, %v144_v10 }
 0x118   :  { %145 = vst.msk [vmem:[#allocation8] sm:$0xff] %vm60_vm0, %v143_v12 }
 0x119   :  { %275 = shalt.err (!%p272_p0)
}
 0x11a   :  { %s276_s27 = scalar_lea.hbm %s389_s3, 256 }
 0x11b   :  { %p277_p1 = scmp.ne.s32.totalorder %s389_s3, %s276_s27  ;;  %p280_p2 = scmp.lt.u32.totalorder %s276_s27, %s389_s3 }
 0x11d   :  { %p282_p3 = pnand %p280_p2, %p277_p1 }
 0x11f   :  { %285 = shalt.err (!%p282_p3)
}
 0x120   :  { %158 = dma.vmem_to_hbm [thread:$0]  %s153_s21, 256, %s389_s3, [#allocation4], %s294_s24, %s294_s24, %s295_s25  }
 0x121   :  { %290 = dma.done.wait [#allocation4], 256  }
 0x122   :  { %291 = vsyncadd [#allocation4], 4294967040 }
 0x123   :  { %162 = vsyncpa [#allocation3], 1 }
 0x124   :  { %163 = vsyncpa [#allocation6], 1 }
 0x125   :  { %164 = vsyncpa [#allocation4], 1 }

// kernel: tpu_custom_call.1
= control target key start
LH: loop header
LB: loop body
LE: loop exit
PB: predicated region body
PF: predicated region fallthrough
CT: control target
= control target key end

     0   :  { %8 = vsyncpa [#allocation3], 0  ;;  %s390_s0 = inlined_call_operand.hbm [shape: f32[16,32], index: 0, kind: input, shape index: {}]   ;;  %s391_s1 = inlined_call_operand.hbm [shape: f32[32,32], index: 1, kind: input, shape index: {}]   ;;  %s392_s2 = inlined_call_operand.hbm [shape: f32[16,32], index: 2, kind: input, shape index: {}]   ;;  %s393_s3 = inlined_call_operand.hbm [shape: f32[16,32], index: 3, kind: output, shape index: {}]  }
   0x1   :  { %9 = vsyncpa [#allocation6], 0 }
   0x2   :  { %10 = vsyncpa [#allocation4], 0  ;;  %s293_s12 = smov [#allocation5]   ;;  %s294_s14 = smov [#allocation2]  }
   0x3   :  { %s28_s13 = sshll.u32 %s293_s12, 4  ;;  %s16_s15 = sshll.u32 %s294_s14, 4  ;;  %s29_s13 = int_to_ptr.vmem [resolvable:$true] %s28_s13  ;;  %s319_s15 = int_to_ptr.vmem [resolvable:$true] %s16_s15 }
   0x4   :  { %s199_s18 = scalar_lea.hbm %s391_s1, 512 }
   0x5   :  { %p200_p0 = scmp.ne.s32.totalorder %s391_s1, %s199_s18  ;;  %p203_p1 = scmp.lt.u32.totalorder %s199_s18, %s391_s1 }
   0x7   :  { %p205_p2 = pnand %p203_p1, %p200_p0 }
   0x9   :  { %208 = shalt.err (!%p205_p2)
}
   0xa   :  { %s209_s23 = scalar_lea.vmem %s29_s13, 512  ;;  %p214_p4 = scmp.lt.s32.totalorder %s29_s13, %s29_s13 }
   0xb   :  { %p210_p3 = scmp.ne.s32.totalorder %s29_s13, %s209_s23  ;;  %p215_p5 = scmp.lt.s32.totalorder %s209_s23, %s209_s23 }
   0xd   :  { %p216_p6 = por %p215_p5, %p214_p4 }
   0xf   :  { %p217_p7 = pnand %p216_p6, %p210_p3 }
  0x11   :  { %220 = shalt.err (!%p217_p7)
}
  0x12   :  { %s295_s24 = smov 128   ;;  %s296_s25 = smov 8  }
  0x13   :  { %34 = dma.hbm_to_vmem [thread:$0]  %s391_s1, 512, %s29_s13, [#allocation6], %s295_s24, %s295_s24, %s296_s25  }
  0x14   :  { %s221_s30 = scalar_lea.hbm %s390_s0, 256 }
  0x15   :  { %p222_p8 = scmp.ne.s32.totalorder %s390_s0, %s221_s30  ;;  %p225_p9 = scmp.lt.u32.totalorder %s221_s30, %s390_s0 }
  0x17   :  { %p227_p10 = pnand %p225_p9, %p222_p8 }
  0x19   :  { %230 = shalt.err (!%p227_p10)
}
  0x1a   :  { %s231_s8 = scalar_lea.vmem %s319_s15, 256  ;;  %p236_p12 = scmp.lt.s32.totalorder %s319_s15, %s319_s15 }
  0x1b   :  { %p232_p11 = scmp.ne.s32.totalorder %s319_s15, %s231_s8  ;;  %p237_p13 = scmp.lt.s32.totalorder %s231_s8, %s231_s8 }
  0x1d   :  { %p238_p0 = por %p237_p13, %p236_p12 }
  0x1f   :  { %p239_p1 = pnand %p238_p0, %p232_p11 }
  0x21   :  { %242 = shalt.err (!%p239_p1)
}
  0x22   :  { %22 = dma.hbm_to_vmem [thread:$0]  %s390_s0, 256, %s319_s15, [#allocation3], %s295_s24, %s295_s24, %s296_s25  }
  0x23   :  { %s297_s10 = smov [#allocation7]   ;;  %s243_s14 = scalar_lea.hbm %s392_s2, 256 }
  0x24   :  { %s40_s11 = sshll.u32 %s297_s10, 4  ;;  %p244_p2 = scmp.ne.s32.totalorder %s392_s2, %s243_s14  ;;  %s41_s11 = int_to_ptr.vmem [resolvable:$true] %s40_s11 }
  0x25   :  { %p247_p3 = scmp.lt.u32.totalorder %s243_s14, %s392_s2 }
  0x27   :  { %p249_p4 = pnand %p247_p3, %p244_p2 }
  0x29   :  { %252 = shalt.err (!%p249_p4)
}
  0x2a   :  { %s253_s20 = scalar_lea.vmem %s41_s11, 256  ;;  %p258_p6 = scmp.lt.s32.totalorder %s41_s11, %s41_s11 }
  0x2b   :  { %p254_p5 = scmp.ne.s32.totalorder %s41_s11, %s253_s20  ;;  %p259_p7 = scmp.lt.s32.totalorder %s253_s20, %s253_s20 }
  0x2d   :  { %p260_p8 = por %p259_p7, %p258_p6 }
  0x2f   :  { %p261_p9 = pnand %p260_p8, %p254_p5 }
  0x31   :  { %264 = shalt.err (!%p261_p9)
}
  0x32   :  { %46 = dma.hbm_to_vmem [thread:$0]  %s392_s2, 256, %s41_s11, [#allocation6], %s295_s24, %s295_s24, %s296_s25  }
  0x33   :  { %287 = dma.done.wait [#allocation3], 256  }
  0x34   :  { %288 = vsyncadd [#allocation3], 4294967040 }
  0x35   :  { %289 = dma.done.wait [#allocation6], 768  }
  0x36   :  { %290 = vsyncadd [#allocation6], 4294966528  ;;  %vm64_vm0 = vcmask 261120   ;;  %v58_v0 = vld [vmem:[#allocation5] sm:$0xff]  ;;  %v59_v1 = vld [vmem:[#allocation5 + $0x8] sm:$0xff]  ;;  %s298_s2 = smov [#allocation8]  }
  0x37   :  { %v60_v2 = vld [vmem:[#allocation5 + $0x10] sm:$0xff]  ;;  %v185_v3 = vpack.c.bf16 %v59_v1, %v58_v0  ;;  %v61_v4 = vld [vmem:[#allocation5 + $0x18] sm:$0xff]  ;;  %v63_v8 = vld [vmem:[#allocation7 + $0x8] sm:$0xff]  ;;  %s153_s21 = sshll.u32 %s298_s2, 4  ;;  %s154_s21 = int_to_ptr.vmem [resolvable:$true] %s153_s21 }
  0x38   :  { %v56_v5 = vld [vmem:[#allocation2] sm:$0xff]  ;;  %v189_v6 = vpack.c.bf16 %v61_v4, %v60_v2  ;;  %v57_v7 = vld [vmem:[#allocation2 + $0x8] sm:$0xff]  ;;  %v62_v9 = vld [vmem:[#allocation7] sm:$0xff]  ;;  %s265_s22 = scalar_lea.vmem %s154_s21, 256  ;;  %p270_p11 = scmp.lt.s32.totalorder %s154_s21, %s154_s21 }
  0x39   :  { %182 = vmatprep.mubr.msk.f32.mxu0 %vm64_vm0, %v56_v5  ;;  %186 = vmatprep.subr.bf16.mxu0 %v185_v3  ;;  %p266_p10 = scmp.ne.s32.totalorder %s154_s21, %s265_s22  ;;  %p271_p12 = scmp.lt.s32.totalorder %s265_s22, %s265_s22 }
  0x3a   :  { %188 = vmatpush3.bf16.msra.mxu0 %v185_v3 }
  0x3b   :  { %190 = vmatprep.subr.bf16.mxu0 %v189_v6  ;;  %p272_p13 = por %p271_p12, %p270_p11 }
  0x3d   :  { %p273_p0 = pnand %p272_p13, %p266_p10 }
  0x3e   :  { %192 = vmatpush3.bf16.msra.mxu0 %v189_v6 }
  0x41   :  { %183 = vmatmul.mubr.msk.f32.vlgmr.msra.gmra.mrb[0].mxu0 %vm64_vm0, %v57_v7 }
 0x114   :  { %v184_v10 = vpop.f32.mrb[0].mxu0 }
 0x115   :  { %v143_v11 = vadd.f32 %v184_v10, %v63_v8  ;;  %v137_v12 = vpop.f32.mrb[1].mxu0 }
 0x116   :  { %v138_v13 = vadd.f32 %v137_v12, %v62_v9 }
 0x117   :  { %147 = vst.msk [vmem:[#allocation8 + $0x8] sm:$0xff] %vm64_vm0, %v143_v11 }
 0x118   :  { %146 = vst.msk [vmem:[#allocation8] sm:$0xff] %vm64_vm0, %v138_v13 }
 0x119   :  { %276 = shalt.err (!%p273_p0)
}
 0x11a   :  { %s277_s27 = scalar_lea.hbm %s393_s3, 256 }
 0x11b   :  { %p278_p1 = scmp.ne.s32.totalorder %s393_s3, %s277_s27  ;;  %p281_p2 = scmp.lt.u32.totalorder %s277_s27, %s393_s3 }
 0x11d   :  { %p283_p3 = pnand %p281_p2, %p278_p1 }
 0x11f   :  { %286 = shalt.err (!%p283_p3)
}
 0x120   :  { %159 = dma.vmem_to_hbm [thread:$0]  %s154_s21, 256, %s393_s3, [#allocation4], %s295_s24, %s295_s24, %s296_s25  }
 0x121   :  { %291 = dma.done.wait [#allocation4], 256  }
 0x122   :  { %292 = vsyncadd [#allocation4], 4294967040 }
 0x123   :  { %163 = vsyncpa [#allocation3], 1 }
 0x124   :  { %164 = vsyncpa [#allocation6], 1 }
 0x125   :  { %165 = vsyncpa [#allocation4], 1 }

// kernel: tpu_custom_call.1
= control target key start
LH: loop header
LB: loop body
LE: loop exit
PB: predicated region body
PF: predicated region fallthrough
CT: control target
= control target key end

     0   :  { %8 = vsyncpa [#allocation3], 0  ;;  %s390_s0 = inlined_call_operand.hbm [shape: f32[16,32], index: 0, kind: input, shape index: {}]   ;;  %s391_s1 = inlined_call_operand.hbm [shape: f32[32,32], index: 1, kind: input, shape index: {}]   ;;  %s392_s2 = inlined_call_operand.hbm [shape: f32[16,32], index: 2, kind: input, shape index: {}]   ;;  %s393_s3 = inlined_call_operand.hbm [shape: f32[16,32], index: 3, kind: output, shape index: {}]  }
   0x1   :  { %9 = vsyncpa [#allocation6], 0 }
   0x2   :  { %10 = vsyncpa [#allocation4], 0  ;;  %s293_s12 = smov [#allocation5]   ;;  %s294_s14 = smov [#allocation2]  }
   0x3   :  { %s28_s13 = sshll.u32 %s293_s12, 4  ;;  %s16_s15 = sshll.u32 %s294_s14, 4  ;;  %s29_s13 = int_to_ptr.vmem [resolvable:$true] %s28_s13  ;;  %s319_s15 = int_to_ptr.vmem [resolvable:$true] %s16_s15 }
   0x4   :  { %s199_s18 = scalar_lea.hbm %s391_s1, 512 }
   0x5   :  { %p200_p0 = scmp.ne.s32.totalorder %s391_s1, %s199_s18  ;;  %p203_p1 = scmp.lt.u32.totalorder %s199_s18, %s391_s1 }
   0x7   :  { %p205_p2 = pnand %p203_p1, %p200_p0 }
   0x9   :  { %208 = shalt.err (!%p205_p2)
}
   0xa   :  { %s209_s23 = scalar_lea.vmem %s29_s13, 512  ;;  %p214_p4 = scmp.lt.s32.totalorder %s29_s13, %s29_s13 }
   0xb   :  { %p210_p3 = scmp.ne.s32.totalorder %s29_s13, %s209_s23  ;;  %p215_p5 = scmp.lt.s32.totalorder %s209_s23, %s209_s23 }
   0xd   :  { %p216_p6 = por %p215_p5, %p214_p4 }
   0xf   :  { %p217_p7 = pnand %p216_p6, %p210_p3 }
  0x11   :  { %220 = shalt.err (!%p217_p7)
}
  0x12   :  { %s295_s24 = smov 128   ;;  %s296_s25 = smov 8  }
  0x13   :  { %34 = dma.hbm_to_vmem [thread:$0]  %s391_s1, 512, %s29_s13, [#allocation6], %s295_s24, %s295_s24, %s296_s25  }
  0x14   :  { %s221_s30 = scalar_lea.hbm %s390_s0, 256 }
  0x15   :  { %p222_p8 = scmp.ne.s32.totalorder %s390_s0, %s221_s30  ;;  %p225_p9 = scmp.lt.u32.totalorder %s221_s30, %s390_s0 }
  0x17   :  { %p227_p10 = pnand %p225_p9, %p222_p8 }
  0x19   :  { %230 = shalt.err (!%p227_p10)
}
  0x1a   :  { %s231_s8 = scalar_lea.vmem %s319_s15, 256  ;;  %p236_p12 = scmp.lt.s32.totalorder %s319_s15, %s319_s15 }
  0x1b   :  { %p232_p11 = scmp.ne.s32.totalorder %s319_s15, %s231_s8  ;;  %p237_p13 = scmp.lt.s32.totalorder %s231_s8, %s231_s8 }
  0x1d   :  { %p238_p0 = por %p237_p13, %p236_p12 }
  0x1f   :  { %p239_p1 = pnand %p238_p0, %p232_p11 }
  0x21   :  { %242 = shalt.err (!%p239_p1)
}
  0x22   :  { %22 = dma.hbm_to_vmem [thread:$0]  %s390_s0, 256, %s319_s15, [#allocation3], %s295_s24, %s295_s24, %s296_s25  }
  0x23   :  { %s297_s10 = smov [#allocation7]   ;;  %s243_s14 = scalar_lea.hbm %s392_s2, 256 }
  0x24   :  { %s40_s11 = sshll.u32 %s297_s10, 4  ;;  %p244_p2 = scmp.ne.s32.totalorder %s392_s2, %s243_s14  ;;  %s41_s11 = int_to_ptr.vmem [resolvable:$true] %s40_s11 }
  0x25   :  { %p247_p3 = scmp.lt.u32.totalorder %s243_s14, %s392_s2 }
  0x27   :  { %p249_p4 = pnand %p247_p3, %p244_p2 }
  0x29   :  { %252 = shalt.err (!%p249_p4)
}
  0x2a   :  { %s253_s20 = scalar_lea.vmem %s41_s11, 256  ;;  %p258_p6 = scmp.lt.s32.totalorder %s41_s11, %s41_s11 }
  0x2b   :  { %p254_p5 = scmp.ne.s32.totalorder %s41_s11, %s253_s20  ;;  %p259_p7 = scmp.lt.s32.totalorder %s253_s20, %s253_s20 }
  0x2d   :  { %p260_p8 = por %p259_p7, %p258_p6 }
  0x2f   :  { %p261_p9 = pnand %p260_p8, %p254_p5 }
  0x31   :  { %264 = shalt.err (!%p261_p9)
}
  0x32   :  { %46 = dma.hbm_to_vmem [thread:$0]  %s392_s2, 256, %s41_s11, [#allocation6], %s295_s24, %s295_s24, %s296_s25  }
  0x33   :  { %287 = dma.done.wait [#allocation3], 256  }
  0x34   :  { %288 = vsyncadd [#allocation3], 4294967040 }
  0x35   :  { %289 = dma.done.wait [#allocation6], 768  }
  0x36   :  { %290 = vsyncadd [#allocation6], 4294966528  ;;  %vm64_vm0 = vcmask 261120   ;;  %v58_v0 = vld [vmem:[#allocation5] sm:$0xff]  ;;  %v59_v1 = vld [vmem:[#allocation5 + $0x8] sm:$0xff]  ;;  %s298_s2 = smov [#allocation8]  }
  0x37   :  { %v60_v2 = vld [vmem:[#allocation5 + $0x10] sm:$0xff]  ;;  %v185_v3 = vpack.c.bf16 %v59_v1, %v58_v0  ;;  %v61_v4 = vld [vmem:[#allocation5 + $0x18] sm:$0xff]  ;;  %v63_v8 = vld [vmem:[#allocation7 + $0x8] sm:$0xff]  ;;  %s153_s21 = sshll.u32 %s298_s2, 4  ;;  %s154_s21 = int_to_ptr.vmem [resolvable:$true] %s153_s21 }
  0x38   :  { %v56_v5 = vld [vmem:[#allocation2] sm:$0xff]  ;;  %v189_v6 = vpack.c.bf16 %v61_v4, %v60_v2  ;;  %v57_v7 = vld [vmem:[#allocation2 + $0x8] sm:$0xff]  ;;  %v62_v9 = vld [vmem:[#allocation7] sm:$0xff]  ;;  %s265_s22 = scalar_lea.vmem %s154_s21, 256  ;;  %p270_p11 = scmp.lt.s32.totalorder %s154_s21, %s154_s21 }
  0x39   :  { %182 = vmatprep.mubr.msk.f32.mxu0 %vm64_vm0, %v56_v5  ;;  %186 = vmatprep.subr.bf16.mxu0 %v185_v3  ;;  %p266_p10 = scmp.ne.s32.totalorder %s154_s21, %s265_s22  ;;  %p271_p12 = scmp.lt.s32.totalorder %s265_s22, %s265_s22 }
  0x3a   :  { %188 = vmatpush3.bf16.msra.mxu0 %v185_v3 }
  0x3b   :  { %190 = vmatprep.subr.bf16.mxu0 %v189_v6  ;;  %p272_p13 = por %p271_p12, %p270_p11 }
  0x3d   :  { %p273_p0 = pnand %p272_p13, %p266_p10 }
  0x3e   :  { %192 = vmatpush3.bf16.msra.mxu0 %v189_v6 }
  0x41   :  { %183 = vmatmul.mubr.msk.f32.vlgmr.msra.gmra.mrb[0].mxu0 %vm64_vm0, %v57_v7 }
 0x114   :  { %v184_v10 = vpop.f32.mrb[0].mxu0 }
 0x115   :  { %v143_v11 = vadd.f32 %v184_v10, %v63_v8  ;;  %v137_v12 = vpop.f32.mrb[1].mxu0 }
 0x116   :  { %v138_v13 = vadd.f32 %v137_v12, %v62_v9 }
 0x117   :  { %147 = vst.msk [vmem:[#allocation8 + $0x8] sm:$0xff] %vm64_vm0, %v143_v11 }
 0x118   :  { %146 = vst.msk [vmem:[#allocation8] sm:$0xff] %vm64_vm0, %v138_v13 }
 0x119   :  { %276 = shalt.err (!%p273_p0)
}
 0x11a   :  { %s277_s27 = scalar_lea.hbm %s393_s3, 256 }
 0x11b   :  { %p278_p1 = scmp.ne.s32.totalorder %s393_s3, %s277_s27  ;;  %p281_p2 = scmp.lt.u32.totalorder %s277_s27, %s393_s3 }
 0x11d   :  { %p283_p3 = pnand %p281_p2, %p278_p1 }
 0x11f   :  { %286 = shalt.err (!%p283_p3)
}
 0x120   :  { %159 = dma.vmem_to_hbm [thread:$0]  %s154_s21, 256, %s393_s3, [#allocation4], %s295_s24, %s295_s24, %s296_s25  }
 0x121   :  { %291 = dma.done.wait [#allocation4], 256  }
 0x122   :  { %292 = vsyncadd [#allocation4], 4294967040 }
 0x123   :  { %163 = vsyncpa [#allocation3], 1 }
 0x124   :  { %164 = vsyncpa [#allocation6], 1 }
 0x125   :  { %165 = vsyncpa [#allocation4], 1 }

</bundles_post_ra>
